<compile_context>
chip_gen: v6e
topology: v6e:2x2x1
jax: 0.10.0
libtpu: 0.0.40
codegen_flags: <defaults>
</compile_context>

<pallas_src>
import functools

import jax
import jax.numpy as jnp
import numpy as np
from jax.experimental import pallas as pl
from jax.experimental.pallas import tpu as pltpu


# ---------------------------------------------------------------------------
# Tiling helpers
# ---------------------------------------------------------------------------
def _round_up(x, m):
    return (x + m - 1) // m * m


def _tile_dim(d, pref, align):
    """Return (tile, padded_dim).  If d <= pref we use the full (unpadded)
    extent - a block dim equal to the full array dim is always legal.
    Otherwise pad to a multiple of `align` and take the largest
    multiple-of-align divisor <= pref."""
    if d <= pref:
        return d, d
    p = _round_up(d, align)
    best = align
    t = align
    while t <= pref:
        if p % t == 0:
            best = t
        t += align
    return best, p


_LANES = 512  # lane-dense last dim for the max-pool reduction kernel


# ---------------------------------------------------------------------------
# Kernel 1: tiled bf16 matmul, f32 accumulate, fused scale/bias(+res)(+ReLU).
# ---------------------------------------------------------------------------
def _mm_kernel_direct(a_ref, b_ref, s_ref, z_ref, *rest, relu, has_res):
    # Fast path: whole K fits one block -> no scratch accumulator needed.
    if has_res:
        r_ref, o_ref = rest
    else:
        (o_ref,) = rest
    out = jnp.dot(a_ref[...], b_ref[...], preferred_element_type=jnp.float32)
    out = out * s_ref[...] + z_ref[...]
    if has_res:
        out = out + r_ref[...]
    if relu:
        out = jnp.maximum(out, 0.0)
    o_ref[...] = out.astype(o_ref.dtype)


def _mm_kernel_acc(a_ref, b_ref, s_ref, z_ref, *rest, relu, has_res):
    if has_res:
        r_ref, o_ref, acc_ref = rest
    else:
        o_ref, acc_ref = rest

    @pl.when(pl.program_id(2) == 0)
    def _():
        acc_ref[...] = jnp.zeros_like(acc_ref)

    acc_ref[...] += jnp.dot(a_ref[...], b_ref[...],
                            preferred_element_type=jnp.float32)

    @pl.when(pl.program_id(2) == pl.num_programs(2) - 1)
    def _():
        out = acc_ref[...] * s_ref[...] + z_ref[...]
        if has_res:
            out = out + r_ref[...]
        if relu:
            out = jnp.maximum(out, 0.0)
        o_ref[...] = out.astype(o_ref.dtype)


def pallas_matmul(a, b, scale=None, bias=None, residual=None, relu=False,
                  out_dtype=jnp.float32,
                  tm_pref=1024, tk_pref=1024, tn_pref=256):
    """act((a @ b) * scale + bias + residual).  a,b cast to bf16; f32 acc."""
    m, k = a.shape
    k2, n = b.shape
    assert k == k2
    if scale is None:
        scale = jnp.ones((n,), jnp.float32)
    if bias is None:
        bias = jnp.zeros((n,), jnp.float32)

    tm, mp = _tile_dim(m, tm_pref, 16)     # bf16 sublane packing -> align 16
    tk, kp = _tile_dim(k, tk_pref, 128)
    tn, np_ = _tile_dim(n, tn_pref, 128)

    a_bf = a.astype(jnp.bfloat16)
    b_bf = b.astype(jnp.bfloat16)
    if (mp, kp) != (m, k):
        a_bf = jnp.pad(a_bf, ((0, mp - m), (0, kp - k)))
    if (kp, np_) != (k, n):
        b_bf = jnp.pad(b_bf, ((0, kp - k), (0, np_ - n)))
    s2 = scale.astype(jnp.float32).reshape(1, n)
    z2 = bias.astype(jnp.float32).reshape(1, n)
    if np_ != n:
        s2 = jnp.pad(s2, ((0, 0), (0, np_ - n)))
        z2 = jnp.pad(z2, ((0, 0), (0, np_ - n)))

    has_res = residual is not None
    inputs = [a_bf, b_bf, s2, z2]
    in_specs = [
        pl.BlockSpec((tm, tk), lambda i, j, kk: (i, kk)),
        pl.BlockSpec((tk, tn), lambda i, j, kk: (kk, j)),
        pl.BlockSpec((1, tn), lambda i, j, kk: (0, j)),
        pl.BlockSpec((1, tn), lambda i, j, kk: (0, j)),
    ]
    if has_res:
        r2 = residual.astype(jnp.float32)
        if (mp, np_) != (m, n):
            r2 = jnp.pad(r2, ((0, mp - m), (0, np_ - n)))
        inputs.append(r2)
        in_specs.append(pl.BlockSpec((tm, tn), lambda i, j, kk: (i, j)))

    kgrid = kp // tk
    if kgrid == 1:
        kern = functools.partial(_mm_kernel_direct, relu=relu, has_res=has_res)
        scratch = []
    else:
        kern = functools.partial(_mm_kernel_acc, relu=relu, has_res=has_res)
        scratch = [pltpu.VMEM((tm, tn), jnp.float32)]

    out = pl.pallas_call(
        kern,
        out_shape=jax.ShapeDtypeStruct((mp, np_), out_dtype),
        grid=(mp // tm, np_ // tn, kgrid),
        in_specs=in_specs,
        out_specs=pl.BlockSpec((tm, tn), lambda i, j, kk: (i, j)),
        scratch_shapes=scratch,
        compiler_params=pltpu.CompilerParams(
            dimension_semantics=("parallel", "parallel", "arbitrary")),
    )(*inputs)
    if (mp, np_) != (m, n):
        out = out[:m, :n]
    return out


# ---------------------------------------------------------------------------
# Kernel 2: 3x3 / stride-2 / pad-1 max pool as a lane-dense 9-way max.
# ---------------------------------------------------------------------------
def _max9_kernel(x_ref, o_ref):
    m = x_ref[0]
    for s in range(1, 9):
        m = jnp.maximum(m, x_ref[s])
    o_ref[...] = m


def max_pool_3x3_s2_p1(x):
    # x: (N, H, W, C) NHWC
    n, h, w, c = x.shape
    ho = (h + 2 - 3) // 2 + 1
    wo = (w + 2 - 3) // 2 + 1
    xp = jnp.pad(x, ((0, 0), (1, 1), (1, 1), (0, 0)),
                 constant_values=-jnp.inf)
    cands = [xp[:, di:di + 2 * (ho - 1) + 1:2, dj:dj + 2 * (wo - 1) + 1:2, :]
             for di in range(3) for dj in range(3)]
    stacked = jnp.stack(cands, axis=0).reshape(9, -1)
    nn_ = n * ho * wo * c
    rows = -(-nn_ // _LANES)
    tr, rows_p = _tile_dim(rows, 256, 8)
    total = rows_p * _LANES
    if total != nn_:
        stacked = jnp.pad(stacked, ((0, 0), (0, total - nn_)),
                          constant_values=-jnp.inf)
    stacked = stacked.reshape(9, rows_p, _LANES)
    out = pl.pallas_call(
        _max9_kernel,
        out_shape=jax.ShapeDtypeStruct((rows_p, _LANES), jnp.float32),
        grid=(rows_p // tr,),
        in_specs=[pl.BlockSpec((9, tr, _LANES), lambda i: (0, i, 0))],
        out_specs=pl.BlockSpec((tr, _LANES), lambda i: (i, 0)),
        compiler_params=pltpu.CompilerParams(dimension_semantics=("parallel",)),
    )(stacked)
    return out.reshape(-1)[:nn_].reshape(n, ho, wo, c)


# ---------------------------------------------------------------------------
# Kernel 3: width pass of the separable bilinear resize (+ fused residual).
# (Height pass is a plain block-diagonal matmul through pallas_matmul.)
# ---------------------------------------------------------------------------
def _wpass_kernel(t_ref, w_ref, o_ref, *, nb):
    wm = w_ref[...]
    for b in range(nb):
        v = jnp.dot(wm, t_ref[b], preferred_element_type=jnp.float32)
        o_ref[b] = v.astype(o_ref.dtype)


def _wpass_res_kernel(t_ref, w_ref, r_ref, o_ref, *, nb):
    wm = w_ref[...]
    for b in range(nb):
        v = jnp.dot(wm, t_ref[b], preferred_element_type=jnp.float32) + r_ref[b]
        o_ref[b] = v.astype(o_ref.dtype)


def _interp_matrix(out_size, in_size, align_corners):
    mat = np.zeros((out_size, in_size), np.float32)
    for i in range(out_size):
        if align_corners:
            src = i * (in_size - 1) / max(out_size - 1, 1)
        else:
            src = max((i + 0.5) * in_size / out_size - 0.5, 0.0)
        lo = min(int(np.floor(src)), in_size - 1)
        hi = min(lo + 1, in_size - 1)
        frac = src - lo
        mat[i, lo] += 1.0 - frac
        mat[i, hi] += frac
    return mat


def bilinear_resize(x, out_h, out_w, align_corners, residual=None,
                    out_dtype=jnp.float32):
    """NHWC separable bilinear resize; optionally fuses `+ residual` (NHWC at
    the output resolution) into the width-pass kernel.  No HBM transposes."""
    n, h, w, c = x.shape
    hmat = _interp_matrix(out_h, h, align_corners)                 # (out_h, h)
    wmat = jnp.asarray(_interp_matrix(out_w, w, align_corners))    # (out_w, w)
    hbd = jnp.asarray(np.kron(np.eye(n, dtype=np.float32), hmat))  # (n*out_h, n*h)

    # Height pass: one block-diagonal MXU matmul on the (n*h, w*c) view.
    t = pallas_matmul(hbd, x.reshape(n * h, w * c))                # (n*out_h, w*c) f32
    t3 = t.reshape(n * out_h, w, c)

    big_b = n * out_h
    tb = 16
    while big_b % tb:
        tb //= 2
    in_specs = [pl.BlockSpec((tb, w, c), lambda i: (i, 0, 0)),
                pl.BlockSpec((out_w, w), lambda i: (0, 0))]
    inputs = [t3, wmat]
    if residual is not None:
        in_specs.append(pl.BlockSpec((tb, out_w, c), lambda i: (i, 0, 0)))
        inputs.append(residual.astype(jnp.float32).reshape(big_b, out_w, c))
        kern = functools.partial(_wpass_res_kernel, nb=tb)
    else:
        kern = functools.partial(_wpass_kernel, nb=tb)
    out = pl.pallas_call(
        kern,
        out_shape=jax.ShapeDtypeStruct((big_b, out_w, c), out_dtype),
        grid=(big_b // tb,),
        in_specs=in_specs,
        out_specs=pl.BlockSpec((tb, out_w, c), lambda i: (i, 0, 0)),
        compiler_params=pltpu.CompilerParams(dimension_semantics=("parallel",)),
    )(*inputs)
    return out.reshape(n, out_h, out_w, c)


# ---------------------------------------------------------------------------
# Kernel 4: R-MAC regional max pooling (+ per-region L2 normalisation, summed).
# ---------------------------------------------------------------------------
def _rmac_regions(h, w, level_n):
    # Faithful port of RMAC._get_regions.
    m = 1
    n_h, n_w = 1, 1
    regions = []
    if h != w:
        min_edge = min(h, w)
        left_space = max(h, w) - min(h, w)
        iou_target = 0.4
        iou_best = 1.0
        while True:
            iou_tmp = (min_edge ** 2 - min_edge * (left_space // m)) / min_edge ** 2
            if iou_tmp <= 0:
                m += 1
                continue
            if abs(iou_tmp - iou_target) <= iou_best:
                iou_best = abs(iou_tmp - iou_target)
                m += 1
            else:
                break
        if h < w:
            n_w = m
        else:
            n_h = m
    for i in range(level_n):
        region_width = int(2 * 1.0 / (i + 2) * min(h, w))
        step_size_h = (h - region_width) // n_h
        step_size_w = (w - region_width) // n_w
        for xx in range(n_h):
            for yy in range(n_w):
                st_x = step_size_h * xx
                ed_x = st_x + region_width - 1
                st_y = step_size_w * yy
                ed_y = st_y + region_width - 1
                regions.append((st_x, st_y, ed_x, ed_y))
        n_h += 1
        n_w += 1
    return regions


def _rmac_kernel(x_ref, o_ref, *, regions):
    # x_ref: (N, H, W, C).  torch slices fea[:, :, st:ed] (exclusive end);
    # replicated exactly.  Block loads + axis reductions per region.
    x = x_ref[...]
    acc = jnp.zeros(o_ref.shape, jnp.float32)
    for (st_x, st_y, ed_x, ed_y) in regions:
        r = x[:, st_x:ed_x, st_y:ed_y, :]
        rf = jnp.max(jnp.max(r, axis=2), axis=1)         # (N, C)
        nrm = jnp.sqrt(jnp.sum(rf * rf, axis=1, keepdims=True))
        acc = acc + rf / nrm
    o_ref[...] = acc


def rmac_pool(fea_nhwc, level_n=3):
    n, h, w, c = fea_nhwc.shape
    regions = _rmac_regions(h, w, level_n)
    return pl.pallas_call(
        functools.partial(_rmac_kernel, regions=regions),
        out_shape=jax.ShapeDtypeStruct((n, c), jnp.float32),
        in_specs=[pl.BlockSpec(memory_space=pltpu.VMEM)],
        out_specs=pl.BlockSpec(memory_space=pltpu.VMEM),
    )(fea_nhwc)


# ---------------------------------------------------------------------------
# Kernel 5: L2Normalization module (x/max then x/||x||, matching torch).
# ---------------------------------------------------------------------------
def _l2norm_kernel(x_ref, o_ref, *, eps):
    x = x_ref[...]
    x = x / jnp.max(x, axis=1, keepdims=True)
    nrm = jnp.sqrt(jnp.sum(x * x, axis=1, keepdims=True)) + eps
    o_ref[...] = x / nrm


def l2_normalization(x, eps=1e-8):
    return pl.pallas_call(
        functools.partial(_l2norm_kernel, eps=eps),
        out_shape=jax.ShapeDtypeStruct(x.shape, jnp.float32),
        in_specs=[pl.BlockSpec(memory_space=pltpu.VMEM)],
        out_specs=pl.BlockSpec(memory_space=pltpu.VMEM),
    )(x)


# ---------------------------------------------------------------------------
# Conv / Linear wrappers (NHWC throughout; pure data movement left to XLA).
# ---------------------------------------------------------------------------
def conv1x1(x, w, scale=None, bias=None, residual=None, relu=False, stride=1):
    # x: (N, H, W, Cin); w: (Cout, Cin, 1, 1)
    if stride > 1:
        x = x[:, ::stride, ::stride, :]
    n, h, wd, cin = x.shape
    cout = w.shape[0]
    wm = w.reshape(cout, cin).T
    res = None if residual is None else residual.reshape(n * h * wd, cout)
    out = pallas_matmul(x.reshape(n * h * wd, cin), wm, scale, bias,
                        residual=res, relu=relu)
    return out.reshape(n, h, wd, cout)


def conv_kxk(x, w, stride, padding, scale=None, bias=None, residual=None,
             relu=False):
    # x: (N, H, W, Cin); w: (Cout, Cin, kh, kw).  bf16 im2col, order (di,dj,c).
    n, h, wd, cin = x.shape
    cout, cin2, kh, kw = w.shape
    assert cin == cin2
    ho = (h + 2 * padding - kh) // stride + 1
    wo = (wd + 2 * padding - kw) // stride + 1
    xb = x.astype(jnp.bfloat16)
    if padding:
        xb = jnp.pad(xb, ((0, 0), (padding, padding), (padding, padding), (0, 0)))
    cols = [xb[:, di:di + stride * (ho - 1) + 1:stride,
               dj:dj + stride * (wo - 1) + 1:stride, :]
            for di in range(kh) for dj in range(kw)]
    patches = jnp.concatenate(cols, axis=-1).reshape(n * ho * wo, kh * kw * cin)
    wm = w.transpose(2, 3, 1, 0).reshape(kh * kw * cin, cout)
    res = None if residual is None else residual.reshape(n * ho * wo, cout)
    out = pallas_matmul(patches, wm, scale, bias, residual=res, relu=relu)
    return out.reshape(n, ho, wo, cout)


def conv_bn(x, w, bn, *, stride, padding, relu, residual=None):
    # Eval-mode BatchNorm folded into the matmul epilogue (per-channel affine).
    scale = bn["gamma"] / jnp.sqrt(bn["var"] + 1e-5)
    bias = bn["beta"] - bn["mean"] * scale
    if w.shape[2] == 1 and w.shape[3] == 1:
        return conv1x1(x, w, scale, bias, residual, relu, stride)
    return conv_kxk(x, w, stride, padding, scale, bias, residual, relu)


def conv_bias(x, cp, *, stride=1, padding=0, relu=False, residual=None):
    w = cp["w"]
    if w.shape[2] == 1 and w.shape[3] == 1:
        return conv1x1(x, w, None, cp["b"], residual, relu, stride)
    return conv_kxk(x, w, stride, padding, None, cp["b"], residual, relu)


def linear(x, lp, relu=False):
    return pallas_matmul(x, lp["w"].T, None, lp["b"], relu=relu)


# ---------------------------------------------------------------------------
# YNet forward (NHWC internally, torch-compatible outputs)
# ---------------------------------------------------------------------------
def bottleneck(x, bp):
    out = conv_bn(x, bp["c1w"], bp["bn1"], stride=1, padding=0, relu=True)
    out = conv_bn(out, bp["c2w"], bp["bn2"], stride=bp["stride"], padding=1,
                  relu=True)
    if "scw" in bp:
        sc = conv_bn(x, bp["scw"], bp["scbn"], stride=bp["stride"], padding=0,
                     relu=False)
    else:
        sc = x
    # conv3 + BN with the shortcut add and the final ReLU fused into the
    # matmul epilogue (out = bn3(conv3(out)) + shortcut; relu).
    return conv_bn(out, bp["c3w"], bp["bn3"], stride=1, padding=0, relu=True,
                   residual=sc)


def run_blocks(blocks, x):
    for bp in blocks:
        x = bottleneck(x, bp)
    return x


def ynet_forward(p, x_nchw):
    x = x_nchw.transpose(0, 2, 3, 1)                       # NCHW -> NHWC once
    h1 = conv_bn(x, p["conv1"], p["bn1"], stride=2, padding=3, relu=True)
    h1 = max_pool_3x3_s2_p1(h1)
    h2 = run_blocks(p["layer2"], h1)
    h3 = run_blocks(p["layer3"], h2)
    h4 = run_blocks(p["layer4"], h3)
    h5 = run_blocks(p["layer5"], h4)

    n = x.shape[0]
    h6 = h5.transpose(0, 3, 1, 2).reshape(n, -1)           # torch NCHW .view
    h_feat = linear(h6, p["fc1"])
    h_cls = linear(h_feat, p["fc2"])

    # FPN mask head; top-down adds fused into the lateral convs / resize.
    s5 = conv_bias(h5, p["toplayer"])
    up5 = bilinear_resize(s5, h4.shape[1], h4.shape[2], align_corners=False)
    s4 = conv_bias(h4, p["latlayer1"], residual=up5)
    up4 = bilinear_resize(s4, h3.shape[1], h3.shape[2], align_corners=False)
    s3 = conv_bias(h3, p["latlayer2"], residual=up4)
    s2 = bilinear_resize(s3, h2.shape[1], h2.shape[2], align_corners=False,
                         residual=h2)
    # nn.Upsample((256,256), mode='bilinear', align_corners=True)
    s1 = bilinear_resize(s2, 256, 256, align_corners=True,
                         out_dtype=jnp.bfloat16)
    s_mask = conv_bias(s1, p["conv7"], padding=1, relu=True)   # conv7 -> ReLU
    s_mask = s_mask.transpose(0, 3, 1, 2)                       # back to NCHW

    c5 = conv_bias(h5, p["conv8"], padding=1)
    c4 = rmac_pool(c5, level_n=3)
    c_feat = l2_normalization(c4)
    c_cls = linear(c_feat, p["fc3"])
    return h_feat, h_cls, s_mask, c_feat, c_cls


# ---------------------------------------------------------------------------
# Deterministic parameter construction (matches the module's layer shapes).
# ---------------------------------------------------------------------------
def init_params(key):
    keys = iter(jax.random.split(key, 64))

    def nk():
        return next(keys)

    def conv_w(cout, cin, k):
        fan_in = cin * k * k
        return jax.random.normal(nk(), (cout, cin, k, k), jnp.float32) * np.sqrt(2.0 / fan_in)

    def bn(c):
        return dict(gamma=jnp.ones((c,), jnp.float32), beta=jnp.zeros((c,), jnp.float32),
                    mean=jnp.zeros((c,), jnp.float32), var=jnp.ones((c,), jnp.float32))

    def convb(cout, cin, k):
        return dict(w=conv_w(cout, cin, k), b=jnp.zeros((cout,), jnp.float32))

    def lin(cout, cin):
        return dict(w=jax.random.normal(nk(), (cout, cin), jnp.float32) / np.sqrt(cin),
                    b=jnp.zeros((cout,), jnp.float32))

    p = {"conv1": conv_w(8, 3, 7), "bn1": bn(8)}
    in_planes = [8]

    def make_layer(planes, num_blocks, stride):
        blocks = []
        for s in [stride] + [1] * (num_blocks - 1):
            bp = dict(stride=s,
                      c1w=conv_w(planes, in_planes[0], 1), bn1=bn(planes),
                      c2w=conv_w(planes, planes, 3), bn2=bn(planes),
                      c3w=conv_w(4 * planes, planes, 1), bn3=bn(4 * planes))
            if s != 1 or in_planes[0] != 4 * planes:
                bp["scw"] = conv_w(4 * planes, in_planes[0], 1)
                bp["scbn"] = bn(4 * planes)
            blocks.append(bp)
            in_planes[0] = 4 * planes
        return blocks

    p["layer2"] = make_layer(8, 2, 1)
    p["layer3"] = make_layer(16, 2, 2)
    p["layer4"] = make_layer(32, 2, 2)
    p["layer5"] = make_layer(64, 2, 2)
    p["toplayer"] = convb(32, 256, 1)
    p["latlayer1"] = convb(32, 128, 1)
    p["latlayer2"] = convb(32, 64, 1)
    p["conv7"] = convb(3, 32, 3)
    p["conv8"] = convb(512, 256, 3)
    p["fc1"] = lin(64, 256 * 8 * 8)
    p["fc2"] = lin(2, 64)
    p["fc3"] = lin(2, 512)
    # NOTE: conv6 exists in the torch module but is unused in forward().
    return p


if __name__ == "__main__":
    key = jax.random.PRNGKey(0)
    k_params, k_x, k_a, k_b, k_r, k_c, k_d, k_p = jax.random.split(key, 8)

    # --- sanity checks of the core kernels (bf16-in / f32-acc reference) ---
    a = jax.random.normal(k_a, (37, 150), jnp.float32)
    b = jax.random.normal(k_b, (150, 70), jnp.float32)
    r = jax.random.normal(k_r, (37, 70), jnp.float32)
    scale = jnp.linspace(0.5, 1.5, 70, dtype=jnp.float32)
    bias = jnp.linspace(-1.0, 1.0, 70, dtype=jnp.float32)
    a_bf = a.astype(jnp.bfloat16).astype(jnp.float32)
    b_bf = b.astype(jnp.bfloat16).astype(jnp.float32)
    got = pallas_matmul(a, b, scale, bias, residual=r, relu=True)
    ref = jnp.maximum(a_bf @ b_bf * scale + bias + r, 0.0)
    assert jnp.allclose(got, ref, rtol=2e-2, atol=2e-2)

    a2 = jax.random.normal(k_c, (64, 3000), jnp.float32)     # exercises K-grid>1
    b2 = jax.random.normal(k_d, (3000, 32), jnp.float32)
    got2 = pallas_matmul(a2, b2)
    ref2 = a2.astype(jnp.bfloat16).astype(jnp.float32) @ b2.astype(jnp.bfloat16).astype(jnp.float32)
    assert jnp.allclose(got2, ref2, rtol=2e-2, atol=2e-2)

    xc = jnp.full((1, 8, 8, 32), 2.5, jnp.float32)           # constant-preserving resize
    rc = bilinear_resize(xc, 16, 16, align_corners=False)
    assert jnp.allclose(rc, 2.5, atol=0.05)

    xm = jax.random.normal(k_p, (1, 16, 16, 8), jnp.float32)
    pool_ref = jax.lax.reduce_window(xm, -jnp.inf, jax.lax.max,
                                     (1, 3, 3, 1), (1, 2, 2, 1),
                                     [(0, 0), (1, 1), (1, 1), (0, 0)])
    assert jnp.allclose(max_pool_3x3_s2_p1(xm), pool_ref, atol=1e-6)

    # --- full YNet forward.  fc1 = Linear(256*8*8, .) and Upsample((256,256))
    # pin the input to (N, 3, 256, 256); small batch of 2. ---
    params = init_params(k_params)
    x = jax.random.normal(k_x, (2, 3, 256, 256), jnp.float32)

    fwd = jax.jit(functools.partial(ynet_forward, params))
    outs = jax.block_until_ready(fwd(x))
    h_feat, h_cls, s_mask, c_feat, c_cls = outs

    assert h_feat.shape == (2, 64)
    assert h_cls.shape == (2, 2)
    assert s_mask.shape == (2, 3, 256, 256)
    assert c_feat.shape == (2, 512)
    assert c_cls.shape == (2, 2)
    for t in outs:
        assert bool(jnp.all(jnp.isfinite(t)))

    print("KERNEL_OK")
</pallas_src>

<mosaic_0001>
module attributes {stable_mosaic.version = 11 : i64} {
  func.func @_mm_kernel_direct(%arg0: i32, %arg1: i32, %arg2: i32, %arg3: memref<37x150xbf16, #tpu.memory_space<vmem>>, %arg4: memref<150x70xbf16, #tpu.memory_space<vmem>>, %arg5: memref<1x70xf32, #tpu.memory_space<vmem>>, %arg6: memref<1x70xf32, #tpu.memory_space<vmem>>, %arg7: memref<37x70xf32, #tpu.memory_space<vmem>>, %arg8: memref<37x70xf32, #tpu.memory_space<vmem>>) attributes {dimension_semantics = [#tpu.dimension_semantics<parallel>, #tpu.dimension_semantics<parallel>, #tpu.dimension_semantics<arbitrary>], iteration_bounds = array<i64: 1, 1, 1>, scalar_prefetch = 0 : i64, scratch_operands = 0 : i64, tpu.core_type = #tpu.core_type<tc>, window_params = [{transform_indices = @transform_0, window_bounds = array<i64: 37, 150>}, {transform_indices = @transform_1, window_bounds = array<i64: 150, 70>}, {transform_indices = @transform_2, window_bounds = array<i64: 1, 70>}, {transform_indices = @transform_3, window_bounds = array<i64: 1, 70>}, {transform_indices = @transform_4, window_bounds = array<i64: 37, 70>}, {transform_indices = @transform_5, window_bounds = array<i64: 37, 70>}]} {
    %c0 = arith.constant 0 : index
    %c0_0 = arith.constant 0 : index
    %0 = vector.load %arg3[%c0, %c0_0] : memref<37x150xbf16, #tpu.memory_space<vmem>>, vector<37x150xbf16>
    %c0_1 = arith.constant 0 : index
    %c0_2 = arith.constant 0 : index
    %1 = vector.load %arg4[%c0_1, %c0_2] : memref<150x70xbf16, #tpu.memory_space<vmem>>, vector<150x70xbf16>
    %cst = arith.constant dense<0.000000e+00> : vector<37x70xf32>
    %2 = tpu.matmul %0, %1, %cst {dimension_numbers = #tpu.dot_dimension_numbers<[1], [0], [0], [1], [0, 0, 1, 1], [], []>} : vector<37x150xbf16>, vector<150x70xbf16>, vector<37x70xf32> -> vector<37x70xf32>
    %c0_3 = arith.constant 0 : index
    %c0_4 = arith.constant 0 : index
    %3 = vector.load %arg5[%c0_3, %c0_4] : memref<1x70xf32, #tpu.memory_space<vmem>>, vector<1x70xf32>
    %4 = vector.broadcast %3 : vector<1x70xf32> to vector<37x70xf32>
    %5 = arith.mulf %2, %4 : vector<37x70xf32>
    %c0_5 = arith.constant 0 : index
    %c0_6 = arith.constant 0 : index
    %6 = vector.load %arg6[%c0_5, %c0_6] : memref<1x70xf32, #tpu.memory_space<vmem>>, vector<1x70xf32>
    %7 = vector.broadcast %6 : vector<1x70xf32> to vector<37x70xf32>
    %8 = arith.addf %5, %7 : vector<37x70xf32>
    %c0_7 = arith.constant 0 : index
    %c0_8 = arith.constant 0 : index
    %9 = vector.load %arg7[%c0_7, %c0_8] : memref<37x70xf32, #tpu.memory_space<vmem>>, vector<37x70xf32>
    %10 = arith.addf %8, %9 : vector<37x70xf32>
    %cst_9 = arith.constant 0.000000e+00 : f32
    %11 = vector.broadcast %cst_9 : f32 to vector<37x70xf32>
    %12 = arith.maximumf %10, %11 : vector<37x70xf32>
    %c0_10 = arith.constant 0 : index
    %c0_11 = arith.constant 0 : index
    %13 = vector.load %arg8[%c0_10, %c0_11] : memref<37x70xf32, #tpu.memory_space<vmem>>, vector<37x70xf32>
    tpu.vector_store %arg8[%c0_10, %c0_11], %12 {strides = array<i32>} : memref<37x70xf32, #tpu.memory_space<vmem>>, vector<37x70xf32>,
    return
  }
  func.func @transform_0(%arg0: i32, %arg1: i32, %arg2: i32) -> (i32, i32) {
    %c0_i32 = arith.constant 0 : i32
    return %arg0, %arg2 : i32, i32
  }
  func.func @transform_1(%arg0: i32, %arg1: i32, %arg2: i32) -> (i32, i32) {
    %c0_i32 = arith.constant 0 : i32
    return %arg2, %arg1 : i32, i32
  }
  func.func @transform_2(%arg0: i32, %arg1: i32, %arg2: i32) -> (i32, i32) {
    %c0_i32 = arith.constant 0 : i32
    %c0_i32_0 = arith.constant 0 : i32
    return %c0_i32, %arg1 : i32, i32
  }
  func.func @transform_3(%arg0: i32, %arg1: i32, %arg2: i32) -> (i32, i32) {
    %c0_i32 = arith.constant 0 : i32
    %c0_i32_0 = arith.constant 0 : i32
    return %c0_i32, %arg1 : i32, i32
  }
  func.func @transform_4(%arg0: i32, %arg1: i32, %arg2: i32) -> (i32, i32) {
    %c0_i32 = arith.constant 0 : i32
    return %arg0, %arg1 : i32, i32
  }
  func.func @transform_5(%arg0: i32, %arg1: i32, %arg2: i32) -> (i32, i32) {
    %c0_i32 = arith.constant 0 : i32
    return %arg0, %arg1 : i32, i32
  }
}

</mosaic_0001>

<bundles_post_ra>
// kernel: tpu_custom_call.1
= control target key start
LH: loop header
LB: loop body
LE: loop exit
PB: predicated region body
PF: predicated region fallthrough
CT: control target
= control target key end

     0   :  { %v344_v1 = vmov 0   ;;  %vm127_vm0 = vcmask 179200   ;;  %s454_s0 = inlined_call_operand.vmem [shape: bf16[37,150], index: 0, kind: input, shape index: {}]   ;;  %s455_s1 = inlined_call_operand.vmem [shape: bf16[150,70], index: 1, kind: input, shape index: {}]   ;;  %s456_s2 = inlined_call_operand.vmem [shape: f32[1,70], index: 2, kind: input, shape index: {}]   ;;  %s457_s3 = inlined_call_operand.vmem [shape: f32[1,70], index: 3, kind: input, shape index: {}]   ;;  %s458_s4 = inlined_call_operand.vmem [shape: f32[37,70], index: 4, kind: input, shape index: {}]   ;;  %s459_s5 = inlined_call_operand.hbm [shape: f32[37,70], index: 5, kind: output, shape index: {}]  }
   0x1   :  { %v304_v0 = vld [vmem:[%s455_s1 + $0x38] sm:$0xff]   ;;  %141 = vmatprep.subr.bf16.mxu0 %v344_v1  ;;  %280 = vmatprep.subr.bf16.mxu1 %v344_v1  ;;  %v305_v2 = vld [vmem:[%s455_s1 + $0x30] sm:$0xff]   ;;  %v306_v3 = vld [vmem:[%s455_s1 + $0x28] sm:$0xff]  }
   0x2   :  { %142 = vmatpush1.bf16.msra.mxu0 %v304_v0  ;;  %290 = vmatpush1.bf16.msra.mxu1 %v304_v0  ;;  %v307_v4 = vld [vmem:[%s455_s1 + $0x20] sm:$0xff]   ;;  %v319_v6 = vld [vmem:[%s454_s0 + $0x14] ss:$8 sps:$4 sm:$0xff]  }
   0x3   :  { %143 = vmatprep.subr.bf16.mxu0 %v344_v1  ;;  %281 = vmatprep.subr.bf16.mxu1 %v344_v1  ;;  %v316_v5 = vld [vmem:[%s454_s0 + $0x4] ss:$8 sps:$4 sm:$0xff]  }
   0x4   :  { %275 = vmatprep.mubr.msk.bf16.mxu0 %vm127_vm0, %v316_v5 }
   0x6   :  { %144 = vmatpush1.bf16.msra.mxu0 %v305_v2  ;;  %291 = vmatpush1.bf16.msra.mxu1 %v305_v2 }
   0x7   :  { %145 = vmatprep.subr.bf16.mxu0 %v344_v1  ;;  %282 = vmatprep.subr.bf16.mxu1 %v344_v1 }
   0xa   :  { %146 = vmatpush1.bf16.msra.mxu0 %v306_v3  ;;  %292 = vmatpush1.bf16.msra.mxu1 %v306_v3 }
   0xb   :  { %147 = vmatprep.subr.bf16.mxu0 %v344_v1  ;;  %283 = vmatprep.subr.bf16.mxu1 %v344_v1 }
   0xc   :  { %10 = vsyncpa [#allocation3], 0  ;;  %v308_v7 = vld [vmem:[%s455_s1 + $0x18] sm:$0xff]   ;;  %276 = vmatprep.mubr.msk.bf16.mxu1 %vm127_vm0, %v319_v6  ;;  %v309_v8 = vld [vmem:[%s455_s1 + $0x10] sm:$0xff]   ;;  %vm137_vm1 = vcmask 1042432   ;;  %vm236_vm2 = vcmask 572416  }
   0xd   :  { %v310_v9 = vld [vmem:[%s455_s1 + $0x8] sm:$0xff]   ;;  %v311_v10 = vld [vmem:[%s455_s1] sm:$0xff]   ;;  %v317_v16 = vld [vmem:[%s454_s0 + $0x10] ss:$8 sps:$4 sm:$0xff]   ;;  %s345_s8 = smov [#allocation2]   ;;  %vm241_vm3 = vcmask 569344  }
   0xe   :  { %148 = vmatpush1.bf16.msra.mxu0 %v307_v4  ;;  %293 = vmatpush1.bf16.msra.mxu1 %v307_v4  ;;  %v312_v11 = vld [vmem:[%s455_s1 + $0x48] ss:$0 sps:$4 sm:$0x77]   ;;  %v313_v13 = vld [vmem:[%s455_s1 + $0x40] sm:$0xff]   ;;  %v223_v26 = vld [vmem:[%s458_s4 + $0x10] sm:$0xff]  ;;  %s248_s9 = sshll.u32 %s345_s8, 4  ;;  %s249_s9 = int_to_ptr.vmem [resolvable:$true] %s248_s9 }
   0xf   :  { %149 = vmatprep.subr.bf16.mxu0 %v344_v1  ;;  %284 = vmatprep.subr.bf16.mxu1 %v344_v1  ;;  %v139_v12 = vsel %vm137_vm1, %v312_v11, 0  ;;  %v26_v14 = vld [vmem:[%s454_s0 + $0x20] sm:$0x77]  ;;  %v222_v37 = vld [vmem:[%s458_s4 + $0x8] sm:$0xff]  ;;  %v224_v38 = vld [vmem:[%s458_s4 + $0x18] sm:$0xff]  ;;  %s322_s10 = scalar_lea.vmem %s249_s9, 640  ;;  %p327_p1 = scmp.lt.s32.totalorder %s249_s9, %s249_s9 }
  0x10   :  { %v314_v15 = vld [vmem:[%s454_s0] ss:$8 sps:$4 sm:$0xff]   ;;  %v264_v17 = vcombine.high %v26_v14, %v26_v14  ;;  %v263_v18 = vcombine.low %v26_v14, %v26_v14  ;;  %p323_p0 = scmp.ne.s32.totalorder %s249_s9, %s322_s10  ;;  %p328_p2 = scmp.lt.s32.totalorder %s322_s10, %s322_s10 }
  0x11   :  { %v278_v19 = vld [vmem:[%s456_s2] ss:$0 sm:$0xff] }
  0x12   :  { %150 = vmatpush1.bf16.msra.mxu0 %v308_v7  ;;  %294 = vmatpush1.bf16.msra.mxu1 %v308_v7  ;;  %v279_v21 = vld [vmem:[%s457_s3] ss:$0 sm:$0xff]  ;;  %p329_p3 = por %p328_p2, %p327_p1 }
  0x13   :  { %151 = vmatprep.subr.bf16.mxu0 %v344_v1  ;;  %285 = vmatprep.subr.bf16.mxu1 %v344_v1  ;;  %v221_v25 = vld [vmem:[%s458_s4] sm:$0xff] }
  0x14   :  { %v225_v49 = vld [vmem:[%s458_s4 + $0x20] sm:$0x1f]  ;;  %p330_p4 = pnand %p329_p3, %p323_p0 }
  0x16   :  { %152 = vmatpush1.bf16.msra.mxu0 %v309_v8  ;;  %295 = vmatpush1.bf16.msra.mxu1 %v309_v8 }
  0x17   :  { %153 = vmatprep.subr.bf16.mxu0 %v344_v1  ;;  %286 = vmatprep.subr.bf16.mxu1 %v344_v1 }
  0x1a   :  { %154 = vmatpush1.bf16.msra.mxu0 %v310_v9  ;;  %296 = vmatpush1.bf16.msra.mxu1 %v310_v9 }
  0x1b   :  { %155 = vmatprep.subr.bf16.mxu0 %v344_v1  ;;  %287 = vmatprep.subr.bf16.mxu1 %v344_v1 }
  0x1e   :  { %156 = vmatpush1.bf16.msra.mxu0 %v311_v10  ;;  %297 = vmatpush1.bf16.msra.mxu1 %v311_v10 }
  0x1f   :  { %169 = vmatprep.subr.bf16.mxu0 %v344_v1  ;;  %288 = vmatprep.subr.bf16.mxu1 %v344_v1 }
  0x22   :  { %170 = vmatpush2.bf16.msra.mxu0 %v139_v12  ;;  %298 = vmatpush2.bf16.msra.mxu1 %v139_v12 }
  0x23   :  { %171 = vmatprep.subr.bf16.mxu0 %v344_v1  ;;  %289 = vmatprep.subr.bf16.mxu1 %v344_v1 }
  0x26   :  { %172 = vmatpush2.bf16.msra.mxu0 %v313_v13  ;;  %299 = vmatpush2.bf16.msra.mxu1 %v313_v13 }
  0x29   :  { %174 = vmatmul.mubr.bf16.vlgmr.msra.gmra.mxu0 %v314_v15  ;;  %182 = vmatmul.mubr.bf16.vlgmr.msra.gmra.mxu1 %v317_v16 }
  0x2a   :  { %277 = vmatprep.mubr.msk.bf16.mxu1 %vm127_vm0, %v264_v17 }
  0x31   :  { %190 = vmatmul.mubr.bf16.gmra.mxu1 %v263_v18 }
  0xe9   :  { %v175_v20 = vpop.f32.mrf.mxu0  ;;  %v183_v22 = vpop.f32.mrf.mxu1 }
  0xea   :  { %v204_v23 = vmul.f32 %v278_v19, %v175_v20  ;;  %v206_v24 = vmul.f32 %v278_v19, %v183_v22 }
  0xeb   :  { %v177_v27 = vpop.f32.mrf.mxu0  ;;  %v185_v28 = vpop.f32.mrf.mxu1 }
  0xec   :  { %v216_v29 = vadd.f32 %v279_v21, %v204_v23  ;;  %v218_v30 = vadd.f32 %v279_v21, %v206_v24 }
  0xed   :  { %v178_v31 = vpop.f32.mrf.mxu0  ;;  %v186_v32 = vpop.f32.mrf.mxu1 }
  0xee   :  { %v226_v33 = vadd.f32 %v221_v25, %v216_v29  ;;  %v228_v34 = vadd.f32 %v223_v26, %v218_v30  ;;  %v205_v35 = vmul.f32 %v278_v19, %v178_v31  ;;  %v207_v36 = vmul.f32 %v278_v19, %v186_v32 }
  0xef   :  { %v180_v39 = vpop.f32.mrf.mxu0  ;;  %v188_v40 = vpop.f32.mrf.mxu1 }
  0xf0   :  { %v231_v41 = vmax.f32 %v226_v33, 0.0  ;;  %v233_v42 = vmax.f32 %v228_v34, 0.0  ;;  %v217_v43 = vadd.f32 %v279_v21, %v205_v35  ;;  %v219_v44 = vadd.f32 %v279_v21, %v207_v36 }
  0xf1   :  { %v191_v45 = vpop.f32.mrf.mxu1 }
  0xf2   :  { %237 = vst.msk [vmem:[#allocation2] sm:$0xff] %vm236_vm2, %v231_v41  ;;  %239 = vst.msk [vmem:[#allocation2 + $0x10] sm:$0xff] %vm236_vm2, %v233_v42  ;;  %v227_v46 = vadd.f32 %v222_v37, %v217_v43  ;;  %v229_v47 = vadd.f32 %v224_v38, %v219_v44  ;;  %v208_v48 = vmul.f32 %v278_v19, %v191_v45 }
  0xf3   :  { %v193_v50 = vpop.f32.mrf.mxu1 }
  0xf4   :  { %v232_v51 = vmax.f32 %v227_v46, 0.0  ;;  %v234_v52 = vmax.f32 %v229_v47, 0.0  ;;  %v220_v53 = vadd.f32 %v279_v21, %v208_v48 }
  0xf5   :  { %v194_v54 = vpop.f32.mrf.mxu1 }
  0xf6   :  { %238 = vst.msk [vmem:[#allocation2 + $0x8] sm:$0xff] %vm236_vm2, %v232_v51  ;;  %240 = vst.msk [vmem:[#allocation2 + $0x18] sm:$0xff] %vm236_vm2, %v234_v52  ;;  %v230_v55 = vadd.f32 %v225_v49, %v220_v53 }
  0xf7   :  { %v195_v56 = vpop.f32.mrf.mxu1 }
  0xf8   :  { %v235_v57 = vmax.f32 %v230_v55, 0.0 }
  0xfa   :  { %242 = vst.msk [vmem:[#allocation2 + $0x20] sm:$0x1f] %vm241_vm3, %v235_v57 }
  0xfb   :  { %333 = shalt.err (!%p330_p4)
}
  0xfc   :  { %s346_s4 = smov 128   ;;  %s347_s11 = smov 8  }
  0xfd   :  { %254 = dma.vmem_to_hbm [thread:$0]  %s249_s9, 640, %s459_s5, [#allocation3], %s346_s4, %s346_s4, %s347_s11  }
  0xfe   :  { %342 = dma.done.wait [#allocation3], 640  }
  0xff   :  { %343 = vsyncadd [#allocation3], 4294966656 }
 0x100   :  { %258 = vsyncpa [#allocation3], 1 }

</bundles_post_ra>
